<compile_context>
chip_gen: v7x
topology: tpu7x:2x2x1
jax: 0.10.0
libtpu: 0.0.40
codegen_flags: <defaults>
</compile_context>

<pallas_src>
import functools
import math

import jax
import jax.numpy as jnp
from jax.experimental import pallas as pl
from jax.experimental.pallas import tpu as pltpu


# ---------------------------------------------------------------------------
# Device-aware VMEM budgeting
# ---------------------------------------------------------------------------
def _device_vmem_capacity_bytes():
    try:
        cap = int(pltpu.get_tpu_info().vmem_capacity_bytes)
        if cap > 0:
            return cap
    except Exception:
        pass
    return 64 * 1024 * 1024   # conservative fallback (v7x-sized)


def _min_sublane_rows(dtype):
    return {1: 32, 2: 16, 4: 8}.get(jnp.dtype(dtype).itemsize, 8)


# ---------------------------------------------------------------------------
# Shared elementwise loss
# ---------------------------------------------------------------------------
def _elementwise_loss(x, y, gn, *, gamma_pos, clip, eps, use_focal, fast_focal):
    """ASL per-element loss (before the global -sum).

    clip == 0 uses log-sigmoid identities:
        log(sigmoid(x))     = -softplus(-x)
        log(1 - sigmoid(x)) = -(x + softplus(-x))
    fast_focal (clip == 0, binary targets): pow(1-pt, g) = exp(g * log(1-pt))
    with log(1-pt) == y*log_neg + (1-y)*log_pos, reusing the logs above.
    """
    clip_on = clip is not None and clip > 0.0
    if clip_on:
        xs_pos = jax.nn.sigmoid(x)
        xs_neg = jnp.minimum((1.0 - xs_pos) + clip, 1.0)
        log_pos = jnp.log(jnp.maximum(xs_pos, eps))
        log_neg = jnp.log(jnp.maximum(xs_neg, eps))
    else:
        log_eps = jnp.float32(math.log(eps))
        t = jnp.exp(-jnp.abs(x))                           # exp(-|x|) in (0, 1]
        sp_negx = jnp.maximum(-x, 0.0) + jnp.log(1.0 + t)  # softplus(-x), stable
        log_pos = jnp.maximum(-sp_negx, log_eps)           # log(sigmoid(x))
        log_neg = jnp.maximum(-(x + sp_negx), log_eps)     # log(1 - sigmoid(x))

    loss = y * log_pos + (1.0 - y) * log_neg

    if use_focal:
        osg = gamma_pos * y + gn * (1.0 - y)
        if fast_focal:
            log1mpt = y * log_neg + (1.0 - y) * log_pos
            loss = loss * jnp.exp(osg * log1mpt)
        else:
            if not clip_on:
                xs_pos = jnp.exp(-sp_negx)
                xs_neg = 1.0 - xs_pos
            pt = xs_pos * y + xs_neg * (1.0 - y)
            loss = loss * jnp.power(1.0 - pt, osg)
    return loss


# ---------------------------------------------------------------------------
# Fused kernel: whole (B, C) problem resident in VMEM, single invocation.
# ---------------------------------------------------------------------------
def _asl_fused_kernel(x_ref, y_ref, loss_ref, gneg_ref, *,
                      gamma_neg, gamma_pos, clip, eps, gap_target, gamma_step,
                      use_focal, need_pass0, fast_focal):
    x = x_ref[...].astype(jnp.float32)
    y = y_ref[...].astype(jnp.float32)

    gn = jnp.float32(gamma_neg)
    if use_focal and need_pass0:
        xs_pos = jax.nn.sigmoid(x)
        xs_neg = 1.0 - xs_pos
        if clip is not None and clip > 0.0:
            xs_neg = jnp.minimum(xs_neg + clip, 1.0)
        s_y = jnp.sum(y)
        n_total = jnp.float32(x.shape[0] * x.shape[1])     # sum(1-y) = N - sum(y)
        gap = (jnp.sum(xs_pos * y) / (s_y + eps)
               - jnp.sum(xs_neg * (1.0 - y)) / ((n_total - s_y) + eps))
        gn = jnp.maximum(gamma_neg + gamma_step * (gap - gap_target), 0.0)

    loss = _elementwise_loss(x, y, gn, gamma_pos=gamma_pos, clip=clip, eps=eps,
                             use_focal=use_focal, fast_focal=fast_focal)
    loss_ref[0] = -jnp.sum(loss)
    gneg_ref[0] = gn


# ---------------------------------------------------------------------------
# Tiled kernel factory: grid = (n_passes, n_row_tiles).
#   stat_acc (VMEM (3, C) f32) : lane-wise sums of pt0, pt1, y   (pass 0 only)
#   loss_acc (VMEM (1, C) f32) : lane-wise sum of the weighted loss
#   gamma_sc (SMEM (1,)  f32)  : effective gamma_neg for the loss pass
#   stash_x/y (VMEM, native)   : optional on-chip copy of the inputs so the
#                                loss pass issues no second HBM read.
# ---------------------------------------------------------------------------
def _make_tiled_kernel(*, total_rows, tile_rows, n_tiles, gamma_neg, gamma_pos,
                       clip, eps, gap_target, gamma_step, use_focal,
                       need_pass0, fast_focal, use_stash):
    clip_on = clip is not None and clip > 0.0
    is_ragged = (total_rows % tile_rows) != 0
    n_passes = 2 if need_pass0 else 1

    def kernel(x_ref, y_ref, loss_ref, gneg_ref, *scratch):
        scr = list(scratch)
        stat_acc = scr.pop(0) if need_pass0 else None
        loss_acc = scr.pop(0)
        gamma_sc = scr.pop(0)
        stash_x = scr.pop(0) if use_stash else None
        stash_y = scr.pop(0) if use_stash else None

        p = pl.program_id(0)
        t = pl.program_id(1)
        n_cols = x_ref.shape[1]
        row0 = pl.multiple_of(t * tile_rows, tile_rows)

        def valid_mask():
            # (tile_rows, 1) row-validity mask; broadcast inside jnp.where.
            rows_left = total_rows - t * tile_rows
            rid = jax.lax.broadcasted_iota(jnp.int32, (tile_rows, 1), 0)
            return rid < rows_left

        # -------- pass 0: adaptive-gamma statistics (+ VMEM stash fill) -----
        if need_pass0:
            @pl.when(p == 0)
            def _stats_pass():
                @pl.when(t == 0)
                def _init():
                    stat_acc[...] = jnp.zeros_like(stat_acc)

                x_nat = x_ref[...]
                y_nat = y_ref[...]
                if use_stash:
                    stash_x[pl.ds(row0, tile_rows), :] = x_nat
                    stash_y[pl.ds(row0, tile_rows), :] = y_nat

                xf = x_nat.astype(jnp.float32)
                yf = y_nat.astype(jnp.float32)
                xs_pos = jax.nn.sigmoid(xf)
                xs_neg = 1.0 - xs_pos
                if clip_on:
                    xs_neg = jnp.minimum(xs_neg + clip, 1.0)
                pt0 = xs_pos * yf
                pt1 = xs_neg * (1.0 - yf)

                def _accum(masked):
                    a, b, c = pt0, pt1, yf
                    if masked:
                        m = valid_mask()
                        a = jnp.where(m, a, 0.0)
                        b = jnp.where(m, b, 0.0)
                        c = jnp.where(m, c, 0.0)
                    # Pass 0 is HBM-bound; the three sub-tile row stores are
                    # hidden under the streaming DMA.
                    stat_acc[0:1, :] += jnp.sum(a, axis=0, keepdims=True)
                    stat_acc[1:2, :] += jnp.sum(b, axis=0, keepdims=True)
                    stat_acc[2:3, :] += jnp.sum(c, axis=0, keepdims=True)

                if is_ragged:
                    @pl.when(t == n_tiles - 1)
                    def _(): _accum(True)
                    @pl.when(t != n_tiles - 1)
                    def _(): _accum(False)
                else:
                    _accum(False)

        # -------- loss pass --------------------------------------------------
        def _loss_pass():
            @pl.when(t == 0)
            def _finalize_gamma():
                loss_acc[...] = jnp.zeros_like(loss_acc)
                if need_pass0:
                    s_pt0 = jnp.sum(stat_acc[0:1, :])
                    s_pt1 = jnp.sum(stat_acc[1:2, :])
                    s_y = jnp.sum(stat_acc[2:3, :])
                    n_total = jnp.float32(total_rows * n_cols)
                    gap = (s_pt0 / (s_y + eps)
                           - s_pt1 / ((n_total - s_y) + eps))
                    gamma_sc[0] = jnp.maximum(
                        gamma_neg + gamma_step * (gap - gap_target), 0.0)
                else:
                    gamma_sc[0] = jnp.float32(gamma_neg)

            if use_stash:
                xf = stash_x[pl.ds(row0, tile_rows), :].astype(jnp.float32)
                yf = stash_y[pl.ds(row0, tile_rows), :].astype(jnp.float32)
            else:
                xf = x_ref[...].astype(jnp.float32)
                yf = y_ref[...].astype(jnp.float32)

            gn = gamma_sc[0]
            loss = _elementwise_loss(xf, yf, gn, gamma_pos=gamma_pos, clip=clip,
                                     eps=eps, use_focal=use_focal,
                                     fast_focal=fast_focal)

            def _accum(masked):
                lv = jnp.where(valid_mask(), loss, 0.0) if masked else loss
                loss_acc[...] += jnp.sum(lv, axis=0, keepdims=True)

            if is_ragged:
                @pl.when(t == n_tiles - 1)
                def _(): _accum(True)
                @pl.when(t != n_tiles - 1)
                def _(): _accum(False)
            else:
                _accum(False)

            @pl.when(t == n_tiles - 1)
            def _writeback():
                loss_ref[0] = -jnp.sum(loss_acc[...])
                gneg_ref[0] = gamma_sc[0]

        if n_passes == 2:
            pl.when(p == 1)(_loss_pass)
        else:
            _loss_pass()

    return kernel


# ---------------------------------------------------------------------------
# Wrapper
# ---------------------------------------------------------------------------
def asymmetric_loss_adaptive(x, y, *, gamma_neg=0.0, gamma_pos=1.0, clip=0.0,
                             eps=1e-8, adaptive=True, gap_target=0.1,
                             gamma_step=0.01, update_adaptive=True,
                             assume_binary_targets=True,
                             tile_rows=None, use_vmem_stash=None,
                             vmem_limit_bytes=None):
    """Asymmetric adaptive loss. Returns (loss_scalar, updated_gamma_neg)."""
    assert x.ndim == 2 and x.shape == y.shape
    B, C = x.shape
    if y.dtype == jnp.bool_:
        y = y.astype(jnp.int8)   # keep 1-byte HBM traffic, avoid bool refs

    use_focal = (gamma_neg > 0.0) or (gamma_pos > 0.0)
    need_pass0 = bool(use_focal and adaptive and update_adaptive)
    clip_f = None if clip is None else float(clip)
    clip_on = clip_f is not None and clip_f > 0.0
    # fast_focal is exact only for hard 0/1 targets with clip == 0.
    fast_focal = bool(use_focal and assume_binary_targets and not clip_on)

    # -------- generation-aware VMEM budget ----------------------------------
    cap = _device_vmem_capacity_bytes()
    if vmem_limit_bytes is None:
        # ~96 MiB on v5e/v6e (128 MiB physical), ~48 MiB on v7x (64 MiB / TC).
        vmem_limit_bytes = int(cap * 3 // 4)
    budget = int(vmem_limit_bytes * 4 // 5)        # headroom for compiler scratch

    isx = jnp.dtype(x.dtype).itemsize
    isy = jnp.dtype(y.dtype).itemsize
    f32_tmp_bytes = 40                             # ~10 live f32 temps / element
    bpe = 2 * (isx + isy) + f32_tmp_bytes          # 2x = double-buffered inputs

    out_shape = (jax.ShapeDtypeStruct((1,), jnp.float32),
                 jax.ShapeDtypeStruct((1,), jnp.float32))
    out_specs = (pl.BlockSpec(memory_space=pltpu.MemorySpace.SMEM),
                 pl.BlockSpec(memory_space=pltpu.MemorySpace.SMEM))
    common = dict(gamma_neg=float(gamma_neg), gamma_pos=float(gamma_pos),
                  clip=clip_f, eps=float(eps), gap_target=float(gap_target),
                  gamma_step=float(gamma_step), use_focal=bool(use_focal),
                  need_pass0=need_pass0, fast_focal=fast_focal)

    # -------- small problems: one resident block, one HBM read --------------
    if tile_rows is None and B * C * bpe <= budget:
        kernel = functools.partial(_asl_fused_kernel, **common)
        loss, gneg = pl.pallas_call(
            kernel,
            out_shape=out_shape,
            grid_spec=pltpu.PrefetchScalarGridSpec(
                num_scalar_prefetch=0,
                grid=(1,),
                in_specs=[pl.BlockSpec((B, C), lambda i: (0, 0)),
                          pl.BlockSpec((B, C), lambda i: (0, 0))],
                out_specs=out_specs),
            compiler_params=pltpu.CompilerParams(
                dimension_semantics=("arbitrary",),
                vmem_limit_bytes=vmem_limit_bytes),
        )(x, y)
        return loss[0], gneg[0]

    # -------- tiled streaming path -------------------------------------------
    min_rows = max(_min_sublane_rows(x.dtype), _min_sublane_rows(y.dtype))
    b_pad = -(-B // min_rows) * min_rows
    stash_bytes_est = b_pad * C * (isx + isy)
    if use_vmem_stash is None:
        use_stash = bool(need_pass0 and stash_bytes_est <= (budget * 3) // 5)
    else:
        use_stash = bool(use_vmem_stash and need_pass0)

    tiling_budget = budget - (stash_bytes_est if use_stash else 0)
    if tile_rows is None:
        tr = (tiling_budget // (max(C, 1) * bpe)) // min_rows * min_rows
        tile_rows = max(min_rows, int(tr))
    else:
        tile_rows = max(min_rows, -(-int(tile_rows) // min_rows) * min_rows)
    tile_rows = int(min(tile_rows, b_pad))
    n_tiles = int(pl.cdiv(B, tile_rows))
    n_passes = 2 if need_pass0 else 1
    stash_rows = n_tiles * tile_rows

    scratch = []
    if need_pass0:
        scratch.append(pltpu.VMEM((3, C), jnp.float32))
    scratch.append(pltpu.VMEM((1, C), jnp.float32))
    scratch.append(pltpu.SMEM((1,), jnp.float32))
    if use_stash:
        scratch.append(pltpu.VMEM((stash_rows, C), x.dtype))
        scratch.append(pltpu.VMEM((stash_rows, C), y.dtype))

    if use_stash:
        # p in {0, 1}: pass 0 streams tile t; the loss pass pins the block
        # index at the last tile, so no new HBM fetches are issued there (the
        # data comes from the VMEM stash filled during pass 0).
        def in_map(p, t):
            return (t + p * (n_tiles - 1 - t), 0)
    else:
        def in_map(p, t):
            return (t, 0)

    kernel = _make_tiled_kernel(total_rows=B, tile_rows=tile_rows,
                                n_tiles=n_tiles, use_stash=use_stash, **common)
    loss, gneg = pl.pallas_call(
        kernel,
        out_shape=out_shape,
        grid_spec=pltpu.PrefetchScalarGridSpec(
            num_scalar_prefetch=0,
            grid=(n_passes, n_tiles),
            in_specs=[pl.BlockSpec((tile_rows, C), in_map),
                      pl.BlockSpec((tile_rows, C), in_map)],
            out_specs=out_specs,
            scratch_shapes=scratch),
        compiler_params=pltpu.CompilerParams(
            dimension_semantics=("arbitrary", "arbitrary"),
            vmem_limit_bytes=vmem_limit_bytes),
    )(x, y)
    return loss[0], gneg[0]


# ---------------------------------------------------------------------------
# Pure-JAX reference (mirrors the PyTorch module's forward)
# ---------------------------------------------------------------------------
def _reference(x, y, gamma_neg=0.0, gamma_pos=1.0, clip=0.0, eps=1e-8,
               adaptive=True, gap_target=0.1, gamma_step=0.01,
               update_adaptive=True):
    x = x.astype(jnp.float32)
    y = y.astype(jnp.float32)
    xs_pos = jax.nn.sigmoid(x)
    xs_neg = 1.0 - xs_pos
    if clip is not None and clip > 0.0:
        xs_neg = jnp.minimum(xs_neg + clip, 1.0)
    los_pos = y * jnp.log(jnp.maximum(xs_pos, eps))
    los_neg = (1.0 - y) * jnp.log(jnp.maximum(xs_neg, eps))
    loss = los_pos + los_neg
    gn = jnp.float32(gamma_neg)
    if gamma_neg > 0.0 or gamma_pos > 0.0:
        pt0 = xs_pos * y
        pt1 = xs_neg * (1.0 - y)
        pt = pt0 + pt1
        if adaptive and update_adaptive:
            gap = (pt0.sum() / (y.sum() + eps)
                   - pt1.sum() / ((1.0 - y).sum() + eps))
            gn = jnp.maximum(gamma_neg + gamma_step * (gap - gap_target), 0.0)
        one_sided_gamma = gamma_pos * y + gn * (1.0 - y)
        loss = loss * jnp.power(1.0 - pt, one_sided_gamma)
    return -loss.sum(), gn


if __name__ == "__main__":
    # TODO(synk): torch.set_grad_enabled has no forward-pass equivalent; the
    # module's in-place self.gamma_neg update is returned as a second output.
    key = jax.random.PRNGKey(0)
    k1, k2, k3, k4 = jax.random.split(key, 4)

    def check(name, got, want, rtol=1e-4, atol=1e-3):
        got = jax.block_until_ready(got)
        assert jnp.allclose(got, want, rtol=rtol, atol=atol), (name, got, want)

    # Case 1: small problem -> fused single-invocation path (f32, adaptive,
    #         clip == 0 -> reduced-transcendental focal weight).
    B, C = 16, 128
    x1 = jax.random.normal(k1, (B, C), dtype=jnp.float32)
    y1 = (jax.random.uniform(k2, (B, C)) > 0.7).astype(jnp.float32)
    l1, g1 = asymmetric_loss_adaptive(x1, y1)
    rl1, rg1 = _reference(x1, y1)
    check("loss1", l1, rl1)
    check("gamma1", g1, rg1, atol=1e-5)

    # Case 2: tiled two-pass path with VMEM stash (single HBM read), ragged
    #         last tile, narrow dtypes (bf16 logits + int8 targets), clip > 0.
    B2, C2 = 72, 128
    x2 = jax.random.normal(k3, (B2, C2), dtype=jnp.float32)
    y2 = jax.random.uniform(k4, (B2, C2)) > 0.6
    l2, g2 = asymmetric_loss_adaptive(
        x2.astype(jnp.bfloat16), y2.astype(jnp.int8),
        gamma_neg=2.0, gamma_pos=1.0, clip=0.05, tile_rows=32)
    rl2, rg2 = _reference(x2.astype(jnp.bfloat16), y2,
                          gamma_neg=2.0, gamma_pos=1.0, clip=0.05)
    check("loss2", l2, rl2)
    check("gamma2", g2, rg2, atol=1e-5)

    # Case 3: tiled single-pass path (adaptive update disabled -> pass 0 and
    #         the stash are skipped), ragged last tile.
    l3, g3 = asymmetric_loss_adaptive(
        x2, y2.astype(jnp.float32), gamma_neg=4.0, gamma_pos=1.0,
        update_adaptive=False, tile_rows=32)
    rl3, rg3 = _reference(x2, y2, gamma_neg=4.0, gamma_pos=1.0,
                          update_adaptive=False)
    check("loss3", l3, rl3)
    check("gamma3", g3, rg3, atol=1e-5)

    # Case 4: tiled adaptive path with the stash force-disabled (two HBM
    #         passes) and clip == 0 -> fast focal weight, ragged last tile.
    l4, g4 = asymmetric_loss_adaptive(
        x2, y2.astype(jnp.float32), gamma_neg=2.0, gamma_pos=1.0, clip=0.0,
        tile_rows=32, use_vmem_stash=False)
    rl4, rg4 = _reference(x2, y2, gamma_neg=2.0, gamma_pos=1.0, clip=0.0)
    check("loss4", l4, rl4)
    check("gamma4", g4, rg4, atol=1e-5)

    # Case 5: tiled adaptive path with stash, non-ragged tiles, clip == 0.
    l5, g5 = asymmetric_loss_adaptive(
        x2[:64], y2[:64].astype(jnp.float32), gamma_neg=3.0, gamma_pos=1.0,
        clip=0.0, tile_rows=16)
    rl5, rg5 = _reference(x2[:64], y2[:64], gamma_neg=3.0, gamma_pos=1.0,
                          clip=0.0)
    check("loss5", l5, rl5)
    check("gamma5", g5, rg5, atol=1e-5)

    print("KERNEL_OK")
</pallas_src>

<mosaic_0001>
module attributes {stable_mosaic.version = 11 : i64} {
  func.func @_asl_fused_kernel(%arg0: i32, %arg1: memref<16x128xf32, #tpu.memory_space<vmem>>, %arg2: memref<16x128xf32, #tpu.memory_space<vmem>>, %arg3: memref<1xf32, #tpu.memory_space<smem>>, %arg4: memref<1xf32, #tpu.memory_space<smem>>) attributes {dimension_semantics = [#tpu.dimension_semantics<arbitrary>], iteration_bounds = array<i64: 1>, scalar_prefetch = 0 : i64, scratch_operands = 0 : i64, tpu.core_type = #tpu.core_type<tc>, window_params = [{pipeline_mode = #tpu.pipeline_mode<synchronous>, transform_indices = @transform_0, window_bounds = array<i64: 16, 128>}, {pipeline_mode = #tpu.pipeline_mode<synchronous>, transform_indices = @transform_1, window_bounds = array<i64: 16, 128>}, {transform_indices = @transform_2, window_bounds = array<i64: 1>}, {transform_indices = @transform_3, window_bounds = array<i64: 1>}]} {
    %c0 = arith.constant 0 : index
    %c0_0 = arith.constant 0 : index
    %0 = vector.load %arg1[%c0, %c0_0] : memref<16x128xf32, #tpu.memory_space<vmem>>, vector<16x128xf32>
    %c0_1 = arith.constant 0 : index
    %c0_2 = arith.constant 0 : index
    %1 = vector.load %arg2[%c0_1, %c0_2] : memref<16x128xf32, #tpu.memory_space<vmem>>, vector<16x128xf32>
    %2 = arith.negf %0 : vector<16x128xf32>
    %3 = math.exp %2 : vector<16x128xf32>
    %cst = arith.constant 1.000000e+00 : f32
    %4 = vector.broadcast %cst : f32 to vector<16x128xf32>
    %5 = arith.addf %4, %3 : vector<16x128xf32>
    %6 = arith.divf %4, %5 : vector<16x128xf32>
    %cst_3 = arith.constant 1.000000e+00 : f32
    %7 = vector.broadcast %cst_3 : f32 to vector<16x128xf32>
    %8 = arith.subf %7, %6 : vector<16x128xf32>
    %9 = vector.shape_cast %1 : vector<16x128xf32> to vector<1x16x128xf32>
    %cst_4 = arith.constant dense<0.000000e+00> : vector<1xf32>
    %10 = vector.multi_reduction <add>, %9, %cst_4 [1, 2] : vector<1x16x128xf32> to vector<1xf32>
    %11 = vector.shape_cast %10 : vector<1xf32> to vector<1x1x1xf32>
    %12 = vector.extract %11[0, 0, 0] : f32 from vector<1x1x1xf32>
    %13 = arith.mulf %6, %1 : vector<16x128xf32>
    %14 = vector.shape_cast %13 : vector<16x128xf32> to vector<1x16x128xf32>
    %cst_5 = arith.constant dense<0.000000e+00> : vector<1xf32>
    %15 = vector.multi_reduction <add>, %14, %cst_5 [1, 2] : vector<1x16x128xf32> to vector<1xf32>
    %16 = vector.shape_cast %15 : vector<1xf32> to vector<1x1x1xf32>
    %17 = vector.extract %16[0, 0, 0] : f32 from vector<1x1x1xf32>
    %cst_6 = arith.constant 9.99999993E-9 : f32
    %18 = arith.addf %12, %cst_6 : f32
    %19 = arith.divf %17, %18 : f32
    %cst_7 = arith.constant 1.000000e+00 : f32
    %20 = vector.broadcast %cst_7 : f32 to vector<16x128xf32>
    %21 = arith.subf %20, %1 : vector<16x128xf32>
    %22 = arith.mulf %8, %21 : vector<16x128xf32>
    %23 = vector.shape_cast %22 : vector<16x128xf32> to vector<1x16x128xf32>
    %cst_8 = arith.constant dense<0.000000e+00> : vector<1xf32>
    %24 = vector.multi_reduction <add>, %23, %cst_8 [1, 2] : vector<1x16x128xf32> to vector<1xf32>
    %25 = vector.shape_cast %24 : vector<1xf32> to vector<1x1x1xf32>
    %26 = vector.extract %25[0, 0, 0] : f32 from vector<1x1x1xf32>
    %cst_9 = arith.constant 2.048000e+03 : f32
    %27 = arith.subf %cst_9, %12 : f32
    %cst_10 = arith.constant 9.99999993E-9 : f32
    %28 = arith.addf %27, %cst_10 : f32
    %29 = arith.divf %26, %28 : f32
    %30 = arith.subf %19, %29 : f32
    %cst_11 = arith.constant 1.000000e-01 : f32
    %31 = arith.subf %30, %cst_11 : f32
    %cst_12 = arith.constant 0.00999999977 : f32
    %32 = arith.mulf %cst_12, %31 : f32
    %cst_13 = arith.constant 0.000000e+00 : f32
    %33 = arith.addf %cst_13, %32 : f32
    %cst_14 = arith.constant 0.000000e+00 : f32
    %34 = arith.maximumf %33, %cst_14 : f32
    %35 = math.absf %0 : vector<16x128xf32>
    %cst_15 = arith.constant 0.000000e+00 : f32
    %36 = vector.broadcast %cst_15 : f32 to vector<16x128xf32>
    %37 = arith.subf %36, %35 : vector<16x128xf32>
    %38 = math.exp %37 : vector<16x128xf32>
    %cst_16 = arith.constant 0.000000e+00 : f32
    %39 = vector.broadcast %cst_16 : f32 to vector<16x128xf32>
    %40 = arith.subf %39, %0 : vector<16x128xf32>
    %cst_17 = arith.constant 0.000000e+00 : f32
    %41 = vector.broadcast %cst_17 : f32 to vector<16x128xf32>
    %42 = arith.maximumf %40, %41 : vector<16x128xf32>
    %cst_18 = arith.constant 1.000000e+00 : f32
    %43 = vector.broadcast %cst_18 : f32 to vector<16x128xf32>
    %44 = arith.addf %43, %38 : vector<16x128xf32>
    %45 = math.log %44 : vector<16x128xf32>
    %46 = arith.addf %42, %45 : vector<16x128xf32>
    %cst_19 = arith.constant 0.000000e+00 : f32
    %47 = vector.broadcast %cst_19 : f32 to vector<16x128xf32>
    %48 = arith.subf %47, %46 : vector<16x128xf32>
    %cst_20 = arith.constant -18.420681 : f32
    %49 = vector.broadcast %cst_20 : f32 to vector<16x128xf32>
    %50 = arith.maximumf %48, %49 : vector<16x128xf32>
    %51 = arith.addf %0, %46 : vector<16x128xf32>
    %cst_21 = arith.constant 0.000000e+00 : f32
    %52 = vector.broadcast %cst_21 : f32 to vector<16x128xf32>
    %53 = arith.subf %52, %51 : vector<16x128xf32>
    %cst_22 = arith.constant -18.420681 : f32
    %54 = vector.broadcast %cst_22 : f32 to vector<16x128xf32>
    %55 = arith.maximumf %53, %54 : vector<16x128xf32>
    %56 = arith.mulf %1, %50 : vector<16x128xf32>
    %cst_23 = arith.constant 1.000000e+00 : f32
    %57 = vector.broadcast %cst_23 : f32 to vector<16x128xf32>
    %58 = arith.subf %57, %1 : vector<16x128xf32>
    %59 = arith.mulf %58, %55 : vector<16x128xf32>
    %60 = arith.addf %56, %59 : vector<16x128xf32>
    %cst_24 = arith.constant 1.000000e+00 : f32
    %61 = vector.broadcast %cst_24 : f32 to vector<16x128xf32>
    %62 = arith.mulf %61, %1 : vector<16x128xf32>
    %cst_25 = arith.constant 1.000000e+00 : f32
    %63 = vector.broadcast %cst_25 : f32 to vector<16x128xf32>
    %64 = arith.subf %63, %1 : vector<16x128xf32>
    %65 = vector.broadcast %34 : f32 to vector<16x128xf32>
    %66 = arith.mulf %65, %64 : vector<16x128xf32>
    %67 = arith.addf %62, %66 : vector<16x128xf32>
    %68 = arith.mulf %1, %55 : vector<16x128xf32>
    %cst_26 = arith.constant 1.000000e+00 : f32
    %69 = vector.broadcast %cst_26 : f32 to vector<16x128xf32>
    %70 = arith.subf %69, %1 : vector<16x128xf32>
    %71 = arith.mulf %70, %50 : vector<16x128xf32>
    %72 = arith.addf %68, %71 : vector<16x128xf32>
    %73 = arith.mulf %67, %72 : vector<16x128xf32>
    %74 = math.exp %73 : vector<16x128xf32>
    %75 = arith.mulf %60, %74 : vector<16x128xf32>
    %76 = vector.shape_cast %75 : vector<16x128xf32> to vector<1x16x128xf32>
    %cst_27 = arith.constant dense<0.000000e+00> : vector<1xf32>
    %77 = vector.multi_reduction <add>, %76, %cst_27 [1, 2] : vector<1x16x128xf32> to vector<1xf32>
    %78 = vector.shape_cast %77 : vector<1xf32> to vector<1x1x1xf32>
    %79 = vector.extract %78[0, 0, 0] : f32 from vector<1x1x1xf32>
    %cst_28 = arith.constant 0.000000e+00 : f32
    %80 = arith.subf %cst_28, %79 : f32
    %c0_29 = arith.constant 0 : index
    %81 = memref.load %arg3[%c0_29] : memref<1xf32, #tpu.memory_space<smem>>
    memref.store %80, %arg3[%c0_29] : memref<1xf32, #tpu.memory_space<smem>>
    %c0_30 = arith.constant 0 : index
    %82 = memref.load %arg4[%c0_30] : memref<1xf32, #tpu.memory_space<smem>>
    memref.store %34, %arg4[%c0_30] : memref<1xf32, #tpu.memory_space<smem>>
    return
  }
  func.func @transform_0(%arg0: i32) -> (i32, i32) {
    %c0_i32 = arith.constant 0 : i32
    %c0_i32_0 = arith.constant 0 : i32
    %c0_i32_1 = arith.constant 0 : i32
    return %c0_i32, %c0_i32_0 : i32, i32
  }
  func.func @transform_1(%arg0: i32) -> (i32, i32) {
    %c0_i32 = arith.constant 0 : i32
    %c0_i32_0 = arith.constant 0 : i32
    %c0_i32_1 = arith.constant 0 : i32
    return %c0_i32, %c0_i32_0 : i32, i32
  }
  func.func @transform_2(%arg0: i32) -> i32 {
    %c0_i32 = arith.constant 0 : i32
    %c0_i32_0 = arith.constant 0 : i32
    return %c0_i32 : i32
  }
  func.func @transform_3(%arg0: i32) -> i32 {
    %c0_i32 = arith.constant 0 : i32
    %c0_i32_0 = arith.constant 0 : i32
    return %c0_i32 : i32
  }
}

</mosaic_0001>

<bundles_post_ra>
// kernel: tpu_custom_call.1
= control target key start
LH: loop header
LB: loop body
LE: loop exit
PB: predicated region body
PF: predicated region fallthrough
CT: control target
= control target key end

     0   :  { %9 = vsyncpa [#allocation3], 0  ;;  %s443_s0 = inlined_call_operand.hbm [shape: f32[16,128], index: 0, kind: input, shape index: {}]   ;;  %s444_s1 = inlined_call_operand.hbm [shape: f32[16,128], index: 1, kind: input, shape index: {}]   ;;  %s445_s2 = inlined_call_operand.hbm [shape: f32[1], index: 2, kind: output, shape index: {0}]   ;;  %s446_s3 = inlined_call_operand.hbm [shape: f32[1], index: 3, kind: output, shape index: {1}]  }
   0x1   :  { %10 = vsyncpa [#allocation6], 0 }
   0x2   :  { %11 = vsyncpa [#allocation4], 0 }
   0x3   :  { %12 = vsyncpa [#allocation9], 0  ;;  %s328_s12 = smov [#allocation2]   ;;  %s256_s16 = scalar_lea.hbm %s443_s0, 256 }
   0x4   :  { %s18_s13 = sshll.u32 %s328_s12, 4  ;;  %p257_p0 = scmp.ne.s32.totalorder %s443_s0, %s256_s16  ;;  %s19_s13 = int_to_ptr.vmem [resolvable:$true] %s18_s13 }
   0x5   :  { %p260_p1 = scmp.lt.u32.totalorder %s256_s16, %s443_s0 }
   0x7   :  { %p262_p2 = pnand %p260_p1, %p257_p0 }
   0x9   :  { %265 = shalt.err (!%p262_p2)
}
   0xa   :  { %s266_s21 = scalar_lea.vmem %s19_s13, 256  ;;  %p271_p4 = scmp.lt.s32.totalorder %s19_s13, %s19_s13 }
   0xb   :  { %p267_p3 = scmp.ne.s32.totalorder %s19_s13, %s266_s21  ;;  %p272_p5 = scmp.lt.s32.totalorder %s266_s21, %s266_s21 }
   0xd   :  { %p273_p6 = por %p272_p5, %p271_p4 }
   0xf   :  { %p274_p7 = pnand %p273_p6, %p267_p3 }
  0x11   :  { %277 = shalt.err (!%p274_p7)
}
  0x12   :  { %s329_s22 = smov 128   ;;  %s330_s23 = smov 8  }
  0x13   :  { %24 = dma.hbm_to_vmem [thread:$0]  %s443_s0, 256, %s19_s13, [#allocation3], %s329_s22, %s329_s22, %s330_s23  }
  0x14   :  { %s331_s26 = smov [#allocation5]   ;;  %s278_s30 = scalar_lea.hbm %s444_s1, 256 }
  0x15   :  { %s30_s27 = sshll.u32 %s331_s26, 4  ;;  %p279_p8 = scmp.ne.s32.totalorder %s444_s1, %s278_s30  ;;  %s31_s27 = int_to_ptr.vmem [resolvable:$true] %s30_s27 }
  0x16   :  { %p282_p9 = scmp.lt.u32.totalorder %s278_s30, %s444_s1 }
  0x18   :  { %p284_p10 = pnand %p282_p9, %p279_p8 }
  0x1a   :  { %287 = shalt.err (!%p284_p10)
}
  0x1b   :  { %s288_s8 = scalar_lea.vmem %s31_s27, 256  ;;  %p293_p12 = scmp.lt.s32.totalorder %s31_s27, %s31_s27 }
  0x1c   :  { %p289_p11 = scmp.ne.s32.totalorder %s31_s27, %s288_s8  ;;  %p294_p13 = scmp.lt.s32.totalorder %s288_s8, %s288_s8 }
  0x1e   :  { %p295_p0 = por %p294_p13, %p293_p12 }
  0x20   :  { %p296_p1 = pnand %p295_p0, %p289_p11 }
  0x22   :  { %299 = shalt.err (!%p296_p1)
}
  0x23   :  { %36 = dma.hbm_to_vmem [thread:$0]  %s444_s1, 256, %s31_s27, [#allocation6], %s329_s22, %s329_s22, %s330_s23  }
  0x24   :  { %320 = dma.done.wait [#allocation3], 256  }
  0x25   :  { %321 = vsyncadd [#allocation3], 4294967040 }
  0x26   :  { %322 = dma.done.wait [#allocation6], 256  }
  0x27   :  { %323 = vsyncadd [#allocation6], 4294967040  ;;  %v379_v0 = vld [vmem:[#allocation5] sm:$0xff]  ;;  %v381_v1 = vld [vmem:[#allocation5 + $0x8] sm:$0xff]  ;;  %s332_s22 = smov 0.0   ;;  %s300_s26 = scalar_lea.hbm %s446_s3, 16 }
  0x28   :  { %v383_v2 = vld [vmem:[#allocation2] sm:$0xff]  ;;  %v61_v3 = vadd.f32 %v381_v1, %v379_v0  ;;  %v387_v4 = vld [vmem:[#allocation2 + $0x8] sm:$0xff]  ;;  %v392_v11 = vsub.f32 1.0, %v379_v0  ;;  %v395_v13 = vsub.f32 1.0, %v381_v1  ;;  %p301_p2 = scmp.ne.s32.totalorder %s446_s3, %s300_s26  ;;  %p304_p3 = scmp.lt.u32.totalorder %s300_s26, %s446_s3 }
  0x29   :  { %v210_v5 = vmul.f32 -1.442695, %v383_v2  ;;  %v211_v6 = vmul.f32 -1.442695, %v387_v4  ;;  %v113_v45 = vand.u32 2147483647, %v383_v2 }
  0x2a   :  { %62 = vadd.xlane.f32.xlu0 %v61_v3  ;;  %v114_v46 = vand.u32 2147483647, %v387_v4  ;;  %v121_v59 = vsub.f32 0.0, %v383_v2  ;;  %v122_v60 = vsub.f32 0.0, %v387_v4  ;;  %p306_p4 = pnand %p304_p3, %p301_p2 }
  0x2b   :  { %232 = vpow2.f32 %v210_v5  ;;  %v115_v49 = vsub.f32 0.0, %v113_v45 }
  0x2c   :  { %234 = vpow2.f32 %v211_v6  ;;  %v116_v50 = vsub.f32 0.0, %v114_v46  ;;  %v123_v62 = vmax.f32 %v121_v59, 0.0  ;;  %v124_v63 = vmax.f32 %v122_v60, 0.0 }
  0x2d   :  { %v117_v52 = vmul.f32 1.442695, %v115_v49 }
  0x2e   :  { %v119_v53 = vmul.f32 1.442695, %v116_v50 }
  0x35   :  { %v233_v7 = vpop.eup %232 }
  0x36   :  { %v235_v8 = vpop.eup %234  ;;  %v53_v9 = vadd.f32 1.0, %v233_v7 }
  0x37   :  { %v54_v10 = vadd.f32 1.0, %v235_v8 }
  0x38   :  { %236 = vrcp.f32 %v53_v9 }
  0x39   :  { %238 = vrcp.f32 %v54_v10 }
  0x42   :  { %v237_v12 = vpop.eup %236 }
  0x43   :  { %v239_v14 = vpop.eup %238  ;;  %v71_v15 = vmul.f32 %v237_v12, %v379_v0  ;;  %v59_v16 = vsub.f32 1.0, %v237_v12 }
  0x44   :  { %v72_v17 = vmul.f32 %v239_v14, %v381_v1  ;;  %v60_v18 = vsub.f32 1.0, %v239_v14 }
  0x45   :  { %v90_v19 = vmul.f32 %v392_v11, %v59_v16 }
  0x46   :  { %v73_v20 = vadd.f32 %v72_v17, %v71_v15  ;;  %v91_v21 = vmul.f32 %v395_v13, %v60_v18 }
  0x48   :  { %74 = vadd.xlane.f32.xlu0 %v73_v20  ;;  %v92_v22 = vadd.f32 %v91_v21, %v90_v19 }
  0x4a   :  { %93 = vadd.xlane.f32.xlu1 %v92_v22 }
  0xb7   :  { %v63_v23 = vpop.xlane.xlu0 %62 }
  0xb8   :  { %v64_v24 = vrot.slane %v63_v23, 4 }
  0xba   :  { %v65_v25 = vadd.f32 %v64_v24, %v63_v23 }
  0xbc   :  { %v66_v26 = vrot.slane %v65_v25, 2 }
  0xbe   :  { %v67_v27 = vadd.f32 %v66_v26, %v65_v25 }
  0xc0   :  { %v68_v28 = vrot.slane %v67_v27, 1 }
  0xc2   :  { %v69_v29 = vadd.f32 %v68_v28, %v67_v27 }
  0xc4   :  { %213 = vpush %v69_v29 }
  0xd5   :  { %v75_v30 = vpop.xlane.xlu0 %74 }
  0xd6   :  { %v76_v31 = vrot.slane %v75_v30, 4 }
  0xd7   :  { %v94_v37 = vpop.xlane.xlu1 %93 }
  0xd8   :  { %v77_v32 = vadd.f32 %v76_v31, %v75_v30  ;;  %v95_v38 = vrot.slane %v94_v37, 4 }
  0xda   :  { %v78_v33 = vrot.slane %v77_v32, 2  ;;  %v96_v39 = vadd.f32 %v95_v38, %v94_v37 }
  0xdc   :  { %v79_v34 = vadd.f32 %v78_v33, %v77_v32  ;;  %v97_v40 = vrot.slane %v96_v39, 2 }
  0xde   :  { %v80_v35 = vrot.slane %v79_v34, 1  ;;  %v98_v43 = vadd.f32 %v97_v40, %v96_v39 }
  0xe0   :  { %v81_v36 = vadd.f32 %v80_v35, %v79_v34  ;;  %v99_v44 = vrot.slane %v98_v43, 1 }
  0xe2   :  { %215 = vpush %v81_v36  ;;  %v100_v48 = vadd.f32 %v99_v44, %v98_v43 }
  0xf5   :  { %s214_s1 = spop %213 }
  0xf6   :  { %s83_s10 = sadd.f32 1e-08, %s214_s1 }
  0xf7   :  { %s102_s11 = ssub.f32 2048.0, %s214_s1 }
  0xf8   :  { %v84_v41 = vstv %s83_s10 }
  0xf9   :  { %240 = vrcp.f32 %v84_v41  ;;  %s103_s12 = sadd.f32 1e-08, %s102_s11 }
  0xfb   :  { %v104_v42 = vstv %s103_s12 }
  0xfc   :  { %242 = vrcp.f32 %v104_v42 }
  0xfd   :  { %244 = vpow2.f32 %v117_v52 }
  0xfe   :  { %246 = vpow2.f32 %v119_v53 }
 0x103   :  { %v241_v47 = vpop.eup %240 }
 0x104   :  { %217 = vpush %v241_v47 }
 0x105   :  { %219 = vpush %v100_v48 }
 0x106   :  { %v243_v51 = vpop.eup %242 }
 0x107   :  { %221 = vpush %v243_v51  ;;  %v245_v54 = vpop.eup %244 }
 0x108   :  { %v247_v55 = vpop.eup %246  ;;  %v125_v56 = vadd.f32 1.0, %v245_v54 }
 0x109   :  { %v126_v57 = vadd.f32 1.0, %v247_v55 }
 0x10a   :  { %248 = vlog2.f32 %v125_v56 }
 0x10b   :  { %250 = vlog2.f32 %v126_v57 }
 0x113   :  { %s216_s13 = spop %215 }
 0x114   :  { %v249_v58 = vpop.eup %248 }
 0x115   :  { %v251_v61 = vpop.eup %250  ;;  %v128_v3 = vmul.f32 0.6931472, %v249_v58 }
 0x116   :  { %v130_v5 = vmul.f32 0.6931472, %v251_v61 }
 0x117   :  { %v131_v6 = vadd.f32 %v128_v3, %v123_v62 }
 0x118   :  { %v132_v7 = vadd.f32 %v130_v5, %v124_v63 }
 0x119   :  { %v137_v8 = vadd.f32 %v131_v6, %v383_v2  ;;  %v133_v10 = vsub.f32 0.0, %v131_v6 }
 0x11a   :  { %v138_v9 = vadd.f32 %v132_v7, %v387_v4  ;;  %v134_v12 = vsub.f32 0.0, %v132_v7 }
 0x11b   :  { %v139_v14 = vsub.f32 0.0, %v137_v8  ;;  %v135_v16 = vmax.f32 %v133_v10, -18.420681 }
 0x11c   :  { %v140_v15 = vsub.f32 0.0, %v138_v9  ;;  %v136_v17 = vmax.f32 %v134_v12, -18.420681 }
 0x11d   :  { %v141_v18 = vmax.f32 %v139_v14, -18.420681  ;;  %v156_v20 = vmul.f32 %v135_v16, %v392_v11  ;;  %v143_v33 = vmul.f32 %v135_v16, %v379_v0 }
 0x11e   :  { %v142_v19 = vmax.f32 %v140_v15, -18.420681  ;;  %v157_v21 = vmul.f32 %v136_v17, %v395_v13  ;;  %v144_v35 = vmul.f32 %v136_v17, %v381_v1 }
 0x11f   :  { %v154_v2 = vmul.f32 %v141_v18, %v379_v0  ;;  %v145_v34 = vmul.f32 %v141_v18, %v392_v11 }
 0x120   :  { %v155_v4 = vmul.f32 %v142_v19, %v381_v1  ;;  %v146_v36 = vmul.f32 %v142_v19, %v395_v13 }
 0x121   :  { %v158_v25 = vadd.f32 %v156_v20, %v154_v2  ;;  %v147_v37 = vadd.f32 %v145_v34, %v143_v33 }
 0x122   :  { %v159_v26 = vadd.f32 %v157_v21, %v155_v4  ;;  %v148_v38 = vadd.f32 %v146_v36, %v144_v35 }
 0x135   :  { %s218_s14 = spop %217 }
 0x136   :  { %s220_s15 = spop %219  ;;  %s87_s16 = smul.f32 %s218_s14, %s216_s13 }
 0x138   :  { %s222_s17 = spop %221 }
 0x139   :  { %s107_s18 = smul.f32 %s222_s17, %s220_s15 }
 0x13b   :  { %s108_s19 = ssub.f32 %s87_s16, %s107_s18 }
 0x13d   :  { %s212_s20 = sadd.f32 -0.1, %s108_s19 }
 0x13f   :  { %s110_s21 = smul.f32 0.01, %s212_s20 }
 0x141   :  { %s112_s23 = smax.f32 %s332_s22, %s110_s21 }
 0x142   :  { %v149_v22 = vstv %s112_s23  ;;  %182 = sst [smem:[#allocation8]] %s112_s23 }
 0x143   :  { %v150_v23 = vmul.f32 %v149_v22, %v392_v11  ;;  %v151_v24 = vmul.f32 %v149_v22, %v395_v13 }
 0x145   :  { %v152_v27 = vadd.f32 %v150_v23, %v379_v0  ;;  %v153_v28 = vadd.f32 %v151_v24, %v381_v1 }
 0x147   :  { %v160_v29 = vmul.f32 %v158_v25, %v152_v27  ;;  %v161_v30 = vmul.f32 %v159_v26, %v153_v28 }
 0x149   :  { %v162_v31 = vmul.f32 1.442695, %v160_v29  ;;  %v164_v32 = vmul.f32 1.442695, %v161_v30 }
 0x14b   :  { %252 = vpow2.f32 %v162_v31 }
 0x14c   :  { %254 = vpow2.f32 %v164_v32 }
 0x155   :  { %v253_v39 = vpop.eup %252 }
 0x156   :  { %v255_v40 = vpop.eup %254  ;;  %v166_v41 = vmul.f32 %v253_v39, %v147_v37 }
 0x157   :  { %v167_v42 = vmul.f32 %v255_v40, %v148_v38 }
 0x159   :  { %v168_v43 = vadd.f32 %v167_v42, %v166_v41 }
 0x15b   :  { %169 = vadd.xlane.f32.xlu1 %v168_v43 }
 0x15c   :  { %309 = shalt.err (!%p306_p4)
}
 0x15d   :  { %s333_s4 = smov [#allocation8]   ;;  %s310_s1 = scalar_lea.hbm %s445_s2, 16 }
 0x15e   :  { %198 = dma.smem_to_hbm %s333_s4, 16, %s446_s3, [#allocation9]  }
 0x15f   :  { %p311_p5 = scmp.ne.s32.totalorder %s445_s2, %s310_s1  ;;  %p314_p6 = scmp.lt.u32.totalorder %s310_s1, %s445_s2 }
 0x161   :  { %p316_p7 = pnand %p314_p6, %p311_p5 }
 0x1e8   :  { %v170_v0 = vpop.xlane.xlu1 %169 }
 0x1e9   :  { %v171_v1 = vrot.slane %v170_v0, 4 }
 0x1eb   :  { %v172_v11 = vadd.f32 %v171_v1, %v170_v0 }
 0x1ed   :  { %v173_v13 = vrot.slane %v172_v11, 2 }
 0x1ef   :  { %v174_v44 = vadd.f32 %v173_v13, %v172_v11 }
 0x1f1   :  { %v175_v45 = vrot.slane %v174_v44, 1 }
 0x1f3   :  { %v176_v46 = vadd.f32 %v175_v45, %v174_v44 }
 0x1f5   :  { %223 = vpush %v176_v46 }
 0x226   :  { %s224_s7 = spop %223 }
 0x227   :  { %s178_s8 = ssub.f32 0.0, %s224_s7 }
 0x229   :  { %180 = sst [smem:[#allocation7]] %s178_s8 }
 0x22a   :  { %319 = shalt.err (!%p316_p7)
}
 0x22b   :  { %s334_s13 = smov [#allocation7]  }
 0x22c   :  { %190 = dma.smem_to_hbm %s334_s13, 16, %s445_s2, [#allocation4]  }
 0x22d   :  { %324 = dma.done.wait [#allocation4], 16  }
 0x22e   :  { %325 = vsyncadd [#allocation4], 4294967280 }
 0x22f   :  { %326 = dma.done.wait [#allocation9], 16  }
 0x230   :  { %327 = vsyncadd [#allocation9], 4294967280 }
 0x231   :  { %205 = sfence }
 0x232   :  { %206 = vsyncpa [#allocation3], 1 }
 0x233   :  { %207 = vsyncpa [#allocation6], 1 }
 0x234   :  { %208 = vsyncpa [#allocation4], 1 }
 0x235   :  { %209 = vsyncpa [#allocation9], 1 }

</bundles_post_ra>
